<compile_context>
chip_gen: v7x
topology: tpu7x:2x2x1
jax: 0.10.0
libtpu: 0.0.40
codegen_flags: <defaults>
</compile_context>

<pallas_src>
import functools
import math

import numpy as np
import jax
import jax.numpy as jnp
from jax import lax
from jax.experimental import pallas as pl
from jax.experimental.pallas import tpu as pltpu


# ----------------------------------------------------------------------------
# Row-tiled linear kernels:  y = x @ W (+ b)
# ----------------------------------------------------------------------------
def _linear_bias_kernel(x_ref, w_ref, b_ref, o_ref):
    acc = jnp.dot(x_ref[...], w_ref[...], preferred_element_type=jnp.float32)
    o_ref[...] = (acc + b_ref[...]).astype(o_ref.dtype)


def _linear_nobias_kernel(x_ref, w_ref, o_ref):
    acc = jnp.dot(x_ref[...], w_ref[...], preferred_element_type=jnp.float32)
    o_ref[...] = acc.astype(o_ref.dtype)


def _linear_vmem_limit(tm, din, dout):
    f32 = 4
    elems = 2 * (tm * din + din * dout + tm * dout + dout) + tm * dout  # dbl-buf + f32 acc
    return int(min(max(2 * elems * f32, 8 << 20), 64 << 20))


def pallas_linear(x2d, w, b=None):
    """x2d: (N, Din), w: (Din, Dout), b: (Dout,) or None -> (N, Dout)."""
    N, Din = x2d.shape
    Dout = w.shape[1]

    # Smaller row tile when the fused-QKV (Dout = 3*nf) makes the weight/output wide
    # (keeps the v5e 16 MiB default scoped VMEM comfortable); 128x MXU M-dim either way.
    tm_target = 256 if Dout >= 1024 else 512

    if N <= tm_target:
        tm, n_pad = N, N                      # single full-extent block (8,128 exempt)
        x_in = x2d
    else:
        tm = tm_target
        n_pad = ((N + tm - 1) // tm) * tm
        x_in = jnp.pad(x2d, ((0, n_pad - N), (0, 0))) if n_pad != N else x2d

    grid = (n_pad // tm,)
    x_spec = pl.BlockSpec((tm, Din), lambda i: (i, 0))
    w_spec = pl.BlockSpec((Din, Dout), lambda i: (0, 0))
    o_spec = pl.BlockSpec((tm, Dout), lambda i: (i, 0))
    cparams = pltpu.CompilerParams(
        dimension_semantics=("parallel",),
        vmem_limit_bytes=_linear_vmem_limit(tm, Din, Dout))

    if b is None:
        out = pl.pallas_call(
            _linear_nobias_kernel,
            out_shape=jax.ShapeDtypeStruct((n_pad, Dout), x2d.dtype),
            grid=grid,
            in_specs=[x_spec, w_spec],
            out_specs=o_spec,
            compiler_params=cparams,
        )(x_in, w)
    else:
        b2d = b.reshape(1, Dout)
        b_spec = pl.BlockSpec((1, Dout), lambda i: (0, 0))
        out = pl.pallas_call(
            _linear_bias_kernel,
            out_shape=jax.ShapeDtypeStruct((n_pad, Dout), x2d.dtype),
            grid=grid,
            in_specs=[x_spec, w_spec, b_spec],
            out_specs=o_spec,
            compiler_params=cparams,
        )(x_in, w, b2d)

    return out[:N] if n_pad != N else out


# ----------------------------------------------------------------------------
# Fused rel-pos attention core: one BATCH element (all heads) per grid step.
#   q/k/v arrive in (B, T, n_feat) layout (head h lives in lanes [h*Dk, (h+1)*Dk)).
#   In-kernel:  qu = q + bias_u ; qv = q + bias_v
#               per head:  ac = qu_h @ k_h^T ; bd = rel_shift(qv_h @ p_h^T)
#               scores = (ac + bd)/sqrt(Dk) + key_mask ; softmax ; ctx = attn @ v_h
#   Per-head contexts land in a (T, nf) VMEM scratch; one lane-dense store at the end.
# ----------------------------------------------------------------------------
def _relpos_attn_kernel(q_ref, k_ref, v_ref, p_ref, u_ref, vb_ref, m_ref, o_ref,
                        acc_ref, *, H, Dk):
    T = q_ref.shape[1]
    Tp = p_ref.shape[0]            # = 2T - 1

    q = q_ref[0]                   # (T, n_feat)
    k = k_ref[0]                   # (T, n_feat)
    v = v_ref[0]                   # (T, n_feat)
    p = p_ref[...]                 # (Tp, n_feat)
    m = m_ref[...]                 # (1, T) additive per-key mask (broadcast over rows)

    # q is read once; both biased views built on the VPU.
    qu = q + u_ref[...]            # (T, n_feat) + (1, n_feat)
    qv = q + vb_ref[...]

    scale = 1.0 / math.sqrt(Dk)

    # ---- rel_shift loop invariants, hoisted out of the unrolled head loop ----
    # Row i is left-shifted by (T-1-i): bd[i, j] = bd_full[i, (T-1-i) + j].
    row = lax.broadcasted_iota(jnp.int32, (T, 1), 0)
    shift_amt = (T - 1) - row                          # (T, 1)
    n_bits = max(1, (T - 1).bit_length())
    w_pad = T + (1 << n_bits) - 1                      # barrel-shift working width
    pad = w_pad - Tp                                   # 0 when T is a power of two
    kbits = list(range(n_bits - 1, -1, -1))
    takes = [((shift_amt >> kb) & 1) == 1 for kb in kbits]   # (T, 1) bools
    pad_zeros = jnp.zeros((T, pad), jnp.float32) if pad > 0 else None

    for h in range(H):
        lo = h * Dk
        qu_h = qu[:, lo:lo + Dk]
        qv_h = qv[:, lo:lo + Dk]
        k_h = k[:, lo:lo + Dk]
        v_h = v[:, lo:lo + Dk]
        p_h = p[:, lo:lo + Dk]

        # matrix_ac = q_u @ k^T -> (T, T)              (MXU)
        ac = lax.dot_general(qu_h, k_h, (((1,), (1,)), ((), ())),
                             preferred_element_type=jnp.float32)
        # un-shifted matrix_bd = q_v @ p^T -> (T, Tp)  (MXU)
        bd_full = lax.dot_general(qv_h, p_h, (((1,), (1,)), ((), ())),
                                  preferred_element_type=jnp.float32)

        # O(log T) barrel shift: static lane slices + selects, predicates precomputed.
        x = bd_full
        if pad_zeros is not None:
            x = jnp.concatenate([x, pad_zeros], axis=-1)
        for take, kb in zip(takes, kbits):
            amt = 1 << kb
            wn = T + amt - 1
            x = jnp.where(take, x[:, amt:amt + wn], x[:, :wn])
        bd = x                                         # (T, T)

        scores = (ac + bd) * scale + m                 # per-key mask broadcast
        s_max = jnp.max(scores, axis=-1, keepdims=True)
        e = jnp.exp(scores - s_max)
        denom = jnp.sum(e, axis=-1, keepdims=True)
        r = pl.reciprocal(denom, approx=True)          # EUP vrcp
        r = r * (2.0 - denom * r)                      # one Newton step, ~2^-24 error
        attn = e * r

        acc_ref[:, lo:lo + Dk] = jnp.dot(attn.astype(v_h.dtype), v_h,
                                         preferred_element_type=jnp.float32)

    # Single lane-dense (T, H*Dk) store.
    o_ref[0] = acc_ref[...].astype(o_ref.dtype)


def _attn_vmem_limit(T, Tp, nf):
    f32 = 4
    elems = (
        3 * T * nf * 2          # q/k/v blocks, double-buffered
        + Tp * nf * 2           # positional projection
        + T * 2                 # per-key mask row
        + T * nf * 2            # output block
        + T * nf                # ctx scratch accumulator
        + 8 * T * max(Tp + 8, T)   # live per-head intermediates (bd working, ac, scores, exp)
    )
    return int(min(max(2 * elems * f32, 8 << 20), 64 << 20))


def relpos_attention_core(q, k, v, p, bias_u, bias_v, key_mask, *, H, Dk):
    """q/k/v: (B,T,nf); p: (Tp,nf); bias_u/v: (1,nf); key_mask: (B,T) additive -> (B,T,nf)."""
    B, T, nf = q.shape
    Tp = p.shape[0]
    kern = functools.partial(_relpos_attn_kernel, H=H, Dk=Dk)
    bt_spec = pl.BlockSpec((1, T, nf), lambda b: (b, 0, 0))
    return pl.pallas_call(
        kern,
        out_shape=jax.ShapeDtypeStruct((B, T, nf), q.dtype),
        grid=(B,),
        in_specs=[
            bt_spec,                                            # q
            bt_spec,                                            # k
            bt_spec,                                            # v
            pl.BlockSpec((Tp, nf), lambda b: (0, 0)),           # p (shared over batch)
            pl.BlockSpec((1, nf), lambda b: (0, 0)),            # pos_bias_u (flattened)
            pl.BlockSpec((1, nf), lambda b: (0, 0)),            # pos_bias_v (flattened)
            pl.BlockSpec((1, T), lambda b: (b, 0)),             # additive per-key mask
        ],
        out_specs=bt_spec,
        scratch_shapes=[pltpu.VMEM((T, nf), jnp.float32)],
        compiler_params=pltpu.CompilerParams(
            dimension_semantics=("parallel",),
            vmem_limit_bytes=_attn_vmem_limit(T, Tp, nf)),
    )(q, k, v, p, bias_u, bias_v, key_mask)


# ----------------------------------------------------------------------------
# Parameter prep: one-time transposes / QKV fusion / bias flattening
# ----------------------------------------------------------------------------
def prepare_params(params):
    H, Dk = params["pos_bias_u"].shape
    nf = H * Dk
    prep = {
        "H": H, "Dk": Dk, "nf": nf,
        "WqT": params["Wq"].T, "bq": params["bq"],
        "WkT": params["Wk"].T, "bk": params["bk"],
        "WvT": params["Wv"].T, "bv": params["bv"],
        "WposT": params["Wpos"].T,
        "WoutT": params["Wout"].T, "bout": params["bout"],
        # fused QKV slab for the self-attention fast path (read activations once)
        "WqkvT": jnp.concatenate([params["Wq"].T, params["Wk"].T, params["Wv"].T], axis=1),
        "bqkv": jnp.concatenate([params["bq"], params["bk"], params["bv"]]),
        # flattened biases: lane h*Dk + d == head h, dim d (matches q lane layout)
        "bias_u": params["pos_bias_u"].reshape(1, nf),
        "bias_v": params["pos_bias_v"].reshape(1, nf),
    }
    return prep


def _normalize_key_mask(mask, B, T):
    """Additive key mask in (B,T) / (B,1,T) / (B,1,1,T) (broadcastable) -> (B, T) f32."""
    m = jnp.asarray(mask)
    if m.ndim == 4:
        if m.shape[2] != 1:
            # TODO(synk): dense per-query (B,1,T,T) masks need a dense-mask kernel variant.
            raise NotImplementedError("only key-broadcast additive masks are supported")
        m = m[:, 0, 0, :]
    elif m.ndim == 3:
        m = m[:, 0, :]
    return jnp.broadcast_to(m, (B, T)).astype(jnp.float32)


# ----------------------------------------------------------------------------
# Full forward (glue is only cheap reshapes; no transposes between pallas calls)
# ----------------------------------------------------------------------------
def onnx_relpos_mha_forward(prep, query, key, value, pos_emb, mask):
    B, T, n_feat = query.shape
    H, Dk = prep["H"], prep["Dk"]
    Tp = pos_emb.shape[1]

    q2d_in = query.reshape(B * T, n_feat)

    if (query is key) and (key is value):
        # Self-attention fast path: fused QKV projection, activations read once.
        qkv = pallas_linear(q2d_in, prep["WqkvT"], prep["bqkv"])        # (B*T, 3nf)
        q = qkv[:, :n_feat].reshape(B, T, n_feat)
        k = qkv[:, n_feat:2 * n_feat].reshape(B, T, n_feat)
        v = qkv[:, 2 * n_feat:].reshape(B, T, n_feat)
    else:
        q = pallas_linear(q2d_in, prep["WqT"], prep["bq"]).reshape(B, T, n_feat)
        k = pallas_linear(key.reshape(B * T, n_feat),
                          prep["WkT"], prep["bk"]).reshape(B, T, n_feat)
        v = pallas_linear(value.reshape(B * T, n_feat),
                          prep["WvT"], prep["bv"]).reshape(B, T, n_feat)

    # linear_pos has no bias in the reference model -> bias-free kernel path.
    p = pallas_linear(pos_emb.reshape(Tp, n_feat), prep["WposT"])        # (Tp, nf)

    key_mask = _normalize_key_mask(mask, B, T)                           # (B, T) additive

    bias_u = prep["bias_u"].astype(q.dtype)
    bias_v = prep["bias_v"].astype(q.dtype)

    ctx = relpos_attention_core(q, k, v, p, bias_u, bias_v, key_mask, H=H, Dk=Dk)
    out = pallas_linear(ctx.reshape(B * T, n_feat), prep["WoutT"], prep["bout"])
    return out.reshape(B, T, n_feat)


# ----------------------------------------------------------------------------
# Pure-JAX reference (mirrors the PyTorch forward, incl. the pad/view rel_shift)
# ----------------------------------------------------------------------------
def reference_forward(params, query, key, value, pos_emb, mask):
    B, T, n_feat = query.shape
    H, Dk = params["pos_bias_u"].shape

    def lin(x, w, b):
        return x @ w.T + b

    def t4s(x):  # transpose_for_scores
        return x.reshape(x.shape[0], x.shape[1], H, Dk).transpose(0, 2, 1, 3)

    q = t4s(lin(query, params["Wq"], params["bq"]))
    k = t4s(lin(key, params["Wk"], params["bk"]))
    v = t4s(lin(value, params["Wv"], params["bv"]))
    p = t4s(pos_emb @ params["Wpos"].T)

    q_u = q + params["pos_bias_u"][None, :, None, :]
    q_v = q + params["pos_bias_v"][None, :, None, :]

    ac = q_u @ k.transpose(0, 1, 3, 2)        # (B,H,T,T)
    bd = q_v @ p.transpose(0, 1, 3, 2)        # (B,H,T,Tp)

    # rel_shift exactly as in the torch module
    zero_pad = jnp.zeros((*bd.shape[:3], 1), bd.dtype)
    bd_p = jnp.concatenate([zero_pad, bd], axis=-1)
    bd_p = bd_p.reshape(bd.shape[0], bd.shape[1], bd.shape[3] + 1, bd.shape[2])
    bd_s = bd_p[:, :, 1:].reshape(bd.shape)[:, :, :, : bd.shape[-1] // 2 + 1]

    scores = (ac + bd_s) / math.sqrt(Dk) + mask        # mask broadcasts (B,1,1,T)
    attn = jax.nn.softmax(scores, axis=-1)
    ctx = attn @ v
    ctx = ctx.transpose(0, 2, 1, 3).reshape(B, T, H * Dk)
    return lin(ctx, params["Wout"], params["bout"])


# ----------------------------------------------------------------------------
if __name__ == "__main__":
    B, T, H, Dk = 2, 8, 4, 16
    n_feat = H * Dk          # 64
    Tp = 2 * T - 1           # 15

    ks = jax.random.split(jax.random.PRNGKey(0), 20)
    s = 0.1

    params = {
        "Wq": s * jax.random.normal(ks[0], (n_feat, n_feat), jnp.float32),
        "bq": s * jax.random.normal(ks[1], (n_feat,), jnp.float32),
        "Wk": s * jax.random.normal(ks[2], (n_feat, n_feat), jnp.float32),
        "bk": s * jax.random.normal(ks[3], (n_feat,), jnp.float32),
        "Wv": s * jax.random.normal(ks[4], (n_feat, n_feat), jnp.float32),
        "bv": s * jax.random.normal(ks[5], (n_feat,), jnp.float32),
        "Wout": s * jax.random.normal(ks[6], (n_feat, n_feat), jnp.float32),
        "bout": s * jax.random.normal(ks[7], (n_feat,), jnp.float32),
        "Wpos": s * jax.random.normal(ks[8], (n_feat, n_feat), jnp.float32),
        "pos_bias_u": s * jax.random.normal(ks[9], (H, Dk), jnp.float32),
        "pos_bias_v": s * jax.random.normal(ks[10], (H, Dk), jnp.float32),
    }
    prep = prepare_params(params)   # one-time: transposed / fused weights, flat biases

    query = jax.random.normal(ks[11], (B, T, n_feat), jnp.float32)
    key_in = jax.random.normal(ks[12], (B, T, n_feat), jnp.float32)
    value = jax.random.normal(ks[13], (B, T, n_feat), jnp.float32)
    pos_emb = jax.random.normal(ks[14], (1, Tp, n_feat), jnp.float32)

    # additive per-key mask (B,1,1,T): batch 0 fully valid, batch 1 last two frames masked
    valid = jnp.array([[1.0] * T, [1.0] * (T - 2) + [0.0, 0.0]], dtype=jnp.float32)
    mask = jnp.where(valid[:, None, None, :] > 0, 0.0, -1e9).astype(jnp.float32)

    # General path (distinct query / key / value)
    out = onnx_relpos_mha_forward(prep, query, key_in, value, pos_emb, mask)
    out = jax.block_until_ready(out)
    ref = reference_forward(params, query, key_in, value, pos_emb, mask)
    np.testing.assert_allclose(np.asarray(out), np.asarray(ref),
                               rtol=2e-4, atol=2e-4)

    # Self-attention path (fused QKV projection)
    out_sa = onnx_relpos_mha_forward(prep, query, query, query, pos_emb, mask)
    out_sa = jax.block_until_ready(out_sa)
    ref_sa = reference_forward(params, query, query, query, pos_emb, mask)
    np.testing.assert_allclose(np.asarray(out_sa), np.asarray(ref_sa),
                               rtol=2e-4, atol=2e-4)

    print("KERNEL_OK")
</pallas_src>

<mosaic_0001>
module attributes {stable_mosaic.version = 11 : i64} {
  func.func @_linear_bias_kernel(%arg0: i32, %arg1: memref<16x64xf32, #tpu.memory_space<vmem>>, %arg2: memref<64x64xf32, #tpu.memory_space<vmem>>, %arg3: memref<1x64xf32, #tpu.memory_space<vmem>>, %arg4: memref<16x64xf32, #tpu.memory_space<vmem>>) attributes {dimension_semantics = [#tpu.dimension_semantics<parallel>], iteration_bounds = array<i64: 1>, scalar_prefetch = 0 : i64, scratch_operands = 0 : i64, tpu.core_type = #tpu.core_type<tc>, window_params = [{transform_indices = @transform_0, window_bounds = array<i64: 16, 64>}, {pipeline_mode = #tpu.pipeline_mode<synchronous>, transform_indices = @transform_1, window_bounds = array<i64: 64, 64>}, {pipeline_mode = #tpu.pipeline_mode<synchronous>, transform_indices = @transform_2, window_bounds = array<i64: 1, 64>}, {transform_indices = @transform_3, window_bounds = array<i64: 16, 64>}]} {
    %c0 = arith.constant 0 : index
    %c0_0 = arith.constant 0 : index
    %0 = vector.load %arg1[%c0, %c0_0] : memref<16x64xf32, #tpu.memory_space<vmem>>, vector<16x64xf32>
    %c0_1 = arith.constant 0 : index
    %c0_2 = arith.constant 0 : index
    %1 = vector.load %arg2[%c0_1, %c0_2] : memref<64x64xf32, #tpu.memory_space<vmem>>, vector<64x64xf32>
    %cst = arith.constant dense<0.000000e+00> : vector<16x64xf32>
    %2 = tpu.matmul %0, %1, %cst {dimension_numbers = #tpu.dot_dimension_numbers<[1], [0], [0], [1], [0, 0, 1, 1], [], []>} : vector<16x64xf32>, vector<64x64xf32>, vector<16x64xf32> -> vector<16x64xf32>
    %c0_3 = arith.constant 0 : index
    %c0_4 = arith.constant 0 : index
    %3 = vector.load %arg3[%c0_3, %c0_4] : memref<1x64xf32, #tpu.memory_space<vmem>>, vector<1x64xf32>
    %4 = vector.broadcast %3 : vector<1x64xf32> to vector<16x64xf32>
    %5 = arith.addf %2, %4 : vector<16x64xf32>
    %c0_5 = arith.constant 0 : index
    %c0_6 = arith.constant 0 : index
    %6 = vector.load %arg4[%c0_5, %c0_6] : memref<16x64xf32, #tpu.memory_space<vmem>>, vector<16x64xf32>
    tpu.vector_store %arg4[%c0_5, %c0_6], %5 {strides = array<i32>} : memref<16x64xf32, #tpu.memory_space<vmem>>, vector<16x64xf32>,
    return
  }
  func.func @transform_0(%arg0: i32) -> (i32, i32) {
    %c0_i32 = arith.constant 0 : i32
    %c0_i32_0 = arith.constant 0 : i32
    return %arg0, %c0_i32 : i32, i32
  }
  func.func @transform_1(%arg0: i32) -> (i32, i32) {
    %c0_i32 = arith.constant 0 : i32
    %c0_i32_0 = arith.constant 0 : i32
    %c0_i32_1 = arith.constant 0 : i32
    return %c0_i32, %c0_i32_0 : i32, i32
  }
  func.func @transform_2(%arg0: i32) -> (i32, i32) {
    %c0_i32 = arith.constant 0 : i32
    %c0_i32_0 = arith.constant 0 : i32
    %c0_i32_1 = arith.constant 0 : i32
    return %c0_i32, %c0_i32_0 : i32, i32
  }
  func.func @transform_3(%arg0: i32) -> (i32, i32) {
    %c0_i32 = arith.constant 0 : i32
    %c0_i32_0 = arith.constant 0 : i32
    return %arg0, %c0_i32 : i32, i32
  }
}

</mosaic_0001>

<bundles_post_ra>
// kernel: tpu_custom_call.1
= control target key start
LH: loop header
LB: loop body
LE: loop exit
PB: predicated region body
PF: predicated region fallthrough
CT: control target
= control target key end

     0   :  { %8 = vsyncpa [#allocation3], 0  ;;  %s364_s0 = inlined_call_operand.hbm [shape: f32[16,64], index: 0, kind: input, shape index: {}]   ;;  %s365_s1 = inlined_call_operand.hbm [shape: f32[64,64], index: 1, kind: input, shape index: {}]   ;;  %s366_s2 = inlined_call_operand.vmem [shape: f32[1,64], index: 2, kind: input, shape index: {}]   ;;  %s367_s3 = inlined_call_operand.hbm [shape: f32[16,64], index: 3, kind: output, shape index: {}]  }
   0x1   :  { %9 = vsyncpa [#allocation6], 0 }
   0x2   :  { %10 = vsyncpa [#allocation4], 0  ;;  %s287_s12 = smov [#allocation2]   ;;  %s215_s16 = scalar_lea.hbm %s364_s0, 256 }
   0x3   :  { %s16_s13 = sshll.u32 %s287_s12, 4  ;;  %p216_p0 = scmp.ne.s32.totalorder %s364_s0, %s215_s16  ;;  %s17_s13 = int_to_ptr.vmem [resolvable:$true] %s16_s13 }
   0x4   :  { %p219_p1 = scmp.lt.u32.totalorder %s215_s16, %s364_s0 }
   0x6   :  { %p221_p2 = pnand %p219_p1, %p216_p0 }
   0x8   :  { %224 = shalt.err (!%p221_p2)
}
   0x9   :  { %s225_s21 = scalar_lea.vmem %s17_s13, 256  ;;  %p230_p4 = scmp.lt.s32.totalorder %s17_s13, %s17_s13 }
   0xa   :  { %p226_p3 = scmp.ne.s32.totalorder %s17_s13, %s225_s21  ;;  %p231_p5 = scmp.lt.s32.totalorder %s225_s21, %s225_s21 }
   0xc   :  { %p232_p6 = por %p231_p5, %p230_p4 }
   0xe   :  { %p233_p7 = pnand %p232_p6, %p226_p3 }
  0x10   :  { %236 = shalt.err (!%p233_p7)
}
  0x11   :  { %s288_s22 = smov 128   ;;  %s289_s23 = smov 8  }
  0x12   :  { %22 = dma.hbm_to_vmem [thread:$0]  %s364_s0, 256, %s17_s13, [#allocation3], %s288_s22, %s288_s22, %s289_s23  }
  0x13   :  { %s290_s26 = smov [#allocation5]   ;;  %s237_s30 = scalar_lea.hbm %s365_s1, 1024 }
  0x14   :  { %s28_s27 = sshll.u32 %s290_s26, 4  ;;  %p238_p8 = scmp.ne.s32.totalorder %s365_s1, %s237_s30  ;;  %s29_s27 = int_to_ptr.vmem [resolvable:$true] %s28_s27 }
  0x15   :  { %p241_p9 = scmp.lt.u32.totalorder %s237_s30, %s365_s1 }
  0x17   :  { %p243_p10 = pnand %p241_p9, %p238_p8 }
  0x19   :  { %246 = shalt.err (!%p243_p10)
}
  0x1a   :  { %s247_s8 = scalar_lea.vmem %s29_s27, 1024  ;;  %p252_p12 = scmp.lt.s32.totalorder %s29_s27, %s29_s27 }
  0x1b   :  { %p248_p11 = scmp.ne.s32.totalorder %s29_s27, %s247_s8  ;;  %p253_p13 = scmp.lt.s32.totalorder %s247_s8, %s247_s8 }
  0x1d   :  { %p254_p0 = por %p253_p13, %p252_p12 }
  0x1f   :  { %p255_p1 = pnand %p254_p0, %p248_p11 }
  0x21   :  { %258 = shalt.err (!%p255_p1)
}
  0x22   :  { %34 = dma.hbm_to_vmem [thread:$0]  %s365_s1, 1024, %s29_s27, [#allocation6], %s288_s22, %s288_s22, %s289_s23  }
  0x23   :  { %281 = dma.done.wait [#allocation3], 256  }
  0x24   :  { %282 = vsyncadd [#allocation3], 4294967040 }
  0x25   :  { %283 = dma.done.wait [#allocation6], 1024  }
  0x26   :  { %284 = vsyncadd [#allocation6], 4294966272  ;;  %v45_v0 = vld [vmem:[#allocation5] sm:$0xff]  ;;  %v46_v1 = vld [vmem:[#allocation5 + $0x8] sm:$0xff]  ;;  %vm60_vm0 = vcmask 523264   ;;  %s291_s11 = smov [#allocation7]  }
  0x27   :  { %v47_v2 = vld [vmem:[#allocation5 + $0x10] sm:$0xff]  ;;  %v194_v3 = vpack.c.bf16 %v46_v1, %v45_v0  ;;  %v48_v4 = vld [vmem:[#allocation5 + $0x18] sm:$0xff]  ;;  %v49_v6 = vld [vmem:[#allocation5 + $0x20] sm:$0xff]  ;;  %s149_s12 = sshll.u32 %s291_s11, 4  ;;  %s150_s12 = int_to_ptr.vmem [resolvable:$true] %s149_s12 }
  0x28   :  { %v198_v5 = vpack.c.bf16 %v48_v4, %v47_v2  ;;  %v50_v7 = vld [vmem:[#allocation5 + $0x28] sm:$0xff]  ;;  %v43_v8 = vld [vmem:[#allocation2] sm:$0xff]  ;;  %v52_v11 = vld [vmem:[#allocation5 + $0x38] sm:$0xff]  ;;  %s259_s13 = scalar_lea.vmem %s150_s12, 256  ;;  %p264_p3 = scmp.lt.s32.totalorder %s150_s12, %s150_s12 }
  0x29   :  { %195 = vmatprep.subr.bf16.mxu0 %v194_v3  ;;  %191 = vmatprep.mubr.msk.f32.mxu0 %vm60_vm0, %v43_v8  ;;  %v202_v9 = vpack.c.bf16 %v50_v7, %v49_v6  ;;  %v51_v10 = vld [vmem:[#allocation5 + $0x30] sm:$0xff]  ;;  %v44_v13 = vld [vmem:[#allocation2 + $0x8] sm:$0xff]  ;;  %p260_p2 = scmp.ne.s32.totalorder %s150_s12, %s259_s13  ;;  %p265_p4 = scmp.lt.s32.totalorder %s259_s13, %s259_s13 }
  0x2a   :  { %197 = vmatpush3.bf16.msra.mxu0 %v194_v3  ;;  %v206_v12 = vpack.c.bf16 %v52_v11, %v51_v10  ;;  %v162_v14 = vld [vmem:[%s366_s2] ss:$0 sm:$0xff] }
  0x2b   :  { %199 = vmatprep.subr.bf16.mxu0 %v198_v5  ;;  %p266_p5 = por %p265_p4, %p264_p3 }
  0x2d   :  { %p267_p6 = pnand %p266_p5, %p260_p2 }
  0x2e   :  { %201 = vmatpush3.bf16.msra.mxu0 %v198_v5 }
  0x2f   :  { %203 = vmatprep.subr.bf16.mxu0 %v202_v9 }
  0x32   :  { %205 = vmatpush3.bf16.msra.mxu0 %v202_v9 }
  0x33   :  { %207 = vmatprep.subr.bf16.mxu0 %v206_v12 }
  0x36   :  { %209 = vmatpush3.bf16.msra.mxu0 %v206_v12 }
  0x39   :  { %192 = vmatmul.mubr.msk.f32.vlgmr.msra.gmra.mrb[0].mxu0 %vm60_vm0, %v44_v13 }
 0x10c   :  { %v193_v15 = vpop.f32.mrb[0].mxu0 }
 0x10d   :  { %v139_v16 = vadd.f32 %v193_v15, %v162_v14  ;;  %v133_v17 = vpop.f32.mrb[1].mxu0 }
 0x10e   :  { %v134_v18 = vadd.f32 %v162_v14, %v133_v17 }
 0x10f   :  { %143 = vst.msk [vmem:[#allocation7 + $0x8] sm:$0xff] %vm60_vm0, %v139_v16 }
 0x110   :  { %142 = vst.msk [vmem:[#allocation7] sm:$0xff] %vm60_vm0, %v134_v18 }
 0x111   :  { %270 = shalt.err (!%p267_p6)
}
 0x112   :  { %s271_s15 = scalar_lea.hbm %s367_s3, 256 }
 0x113   :  { %p272_p7 = scmp.ne.s32.totalorder %s367_s3, %s271_s15  ;;  %p275_p8 = scmp.lt.u32.totalorder %s271_s15, %s367_s3 }
 0x115   :  { %p277_p9 = pnand %p275_p8, %p272_p7 }
 0x117   :  { %280 = shalt.err (!%p277_p9)
}
 0x118   :  { %155 = dma.vmem_to_hbm [thread:$0]  %s150_s12, 256, %s367_s3, [#allocation4], %s288_s22, %s288_s22, %s289_s23  }
 0x119   :  { %285 = dma.done.wait [#allocation4], 256  }
 0x11a   :  { %286 = vsyncadd [#allocation4], 4294967040 }
 0x11b   :  { %159 = vsyncpa [#allocation3], 1 }
 0x11c   :  { %160 = vsyncpa [#allocation6], 1 }
 0x11d   :  { %161 = vsyncpa [#allocation4], 1 }

</bundles_post_ra>
